<compile_context>
chip_gen: v6e
topology: v6e:2x2x1
jax: 0.10.0
libtpu: 0.0.40
codegen_flags: <defaults>
</compile_context>

<pallas_src>
import jax
import jax.numpy as jnp
from jax.experimental import pallas as pl
from jax.experimental.pallas import tpu as pltpu


def _round_up(n, m):
    return (n + m - 1) // m * m


def _ffn_kernel(x_ref, w1_ref, b1_ref, w2_ref, b2_ref, o_ref):
    # fc1 on the MXU (f32 in, f32 accumulate): [bb, F] @ [F, Hp] -> [bb, Hp].
    h = jnp.dot(x_ref[...], w1_ref[...], preferred_element_type=jnp.float32)
    # bias + ReLU fused on the VPU; b1 is a lane-dense (1, Hp) row (sublane bcast).
    h = jnp.maximum(h + b1_ref[...], 0.0)
    # fc2 (H -> 1): VPU multiply by the (1, Hp) w2 row + cross-lane (XLU) reduce.
    z = jnp.sum(h * w2_ref[...], axis=1, keepdims=True) + b2_ref[0, 0]
    o_ref[...] = jax.nn.sigmoid(z).astype(o_ref.dtype)


def prep_params(w1, b1, w2, b2):
    """One-time layout prep (hoisted out of the per-call path).

    w1: [F, H], b1: [1, H], w2: [H, 1], b2: [1, 1] -> lane-dense rows, H padded to 128.
    """
    F, H = w1.shape
    Hp = _round_up(H, 128)
    w1p = jnp.pad(w1.astype(jnp.float32), ((0, 0), (0, Hp - H)))    # [F, Hp]
    b1p = jnp.pad(b1.astype(jnp.float32), ((0, 0), (0, Hp - H)))    # [1, Hp]
    w2p = jnp.pad(w2.astype(jnp.float32).T, ((0, 0), (0, Hp - H)))  # [1, Hp]
    b2p = b2.astype(jnp.float32).reshape(1, 1)                      # [1, 1] -> SMEM
    return w1p, b1p, w2p, b2p


def _batch_tiling(B, max_block=2048):
    """Pick (block_b, Bp): minimal padding, big tiles, >=2 grid steps for large B."""
    if B <= 128:
        blk = max(8, _round_up(B, 8))          # single minimal tile (f32 sublane = 8)
        return blk, blk
    Bp128 = _round_up(B, 128)
    steps = max(2, pl.cdiv(Bp128, max_block))  # >=2 steps so v7x megacore splits work
    blk = _round_up(pl.cdiv(Bp128, steps), 128)
    return blk, steps * blk


@jax.jit
def ffn_forward(x, w1p, b1p, w2p, b2p):
    """sigmoid(relu(x @ W1 + b1) @ W2 + b2) with prepped params. x: [B, F] f32 -> [B, 1]."""
    B, F = x.shape
    Hp = w1p.shape[1]
    assert w1p.shape[0] == F and b1p.shape == (1, Hp)
    assert w2p.shape == (1, Hp) and b2p.shape == (1, 1)

    block_b, Bp = _batch_tiling(B)
    xp = x if Bp == B else jnp.pad(x, ((0, Bp - B), (0, 0)))  # zero rows, sliced off below

    out = pl.pallas_call(
        _ffn_kernel,
        out_shape=jax.ShapeDtypeStruct((Bp, 1), jnp.float32),
        grid_spec=pl.GridSpec(
            grid=(Bp // block_b,),
            in_specs=[
                pl.BlockSpec((block_b, F), lambda i: (i, 0)),       # x tile, untransposed
                # NOTE: grid-invariant operands below could be single-buffered via
                # pipeline_mode=pl.Buffered(1); footprint is tiny at these sizes.
                pl.BlockSpec((F, Hp), lambda i: (0, 0)),            # W1 resident, lane-dense
                pl.BlockSpec((1, Hp), lambda i: (0, 0)),            # b1 row
                pl.BlockSpec((1, Hp), lambda i: (0, 0)),            # w2 row
                pl.BlockSpec(memory_space=pltpu.MemorySpace.SMEM),  # b2 scalar
            ],
            out_specs=pl.BlockSpec((block_b, 1), lambda i: (i, 0)),
        ),
        compiler_params=pltpu.CompilerParams(
            dimension_semantics=("parallel",),
        ),
    )(xp, w1p, b1p, w2p, b2p)

    return out[:B]


def init_params(key, input_size, hidden_size, output_size):
    """Deterministic init mimicking nn.Linear default (uniform +/- 1/sqrt(fan_in))."""
    k1, k2, k3, k4 = jax.random.split(key, 4)
    bound1 = 1.0 / (input_size ** 0.5)
    bound2 = 1.0 / (hidden_size ** 0.5)
    w1 = jax.random.uniform(k1, (input_size, hidden_size), jnp.float32, -bound1, bound1)
    b1 = jax.random.uniform(k2, (1, hidden_size), jnp.float32, -bound1, bound1)
    w2 = jax.random.uniform(k3, (hidden_size, output_size), jnp.float32, -bound2, bound2)
    b2 = jax.random.uniform(k4, (1, output_size), jnp.float32, -bound2, bound2)
    return w1, b1, w2, b2


if __name__ == "__main__":
    # Small synthetic shapes consistent with the module's forward:
    # batch=8 tabular rows, input_size=30 features, hidden=207 (as in script), output=1.
    batch = 8
    input_size = 30
    hidden_size = 207
    output_size = 1

    key = jax.random.PRNGKey(0)
    kx, kp = jax.random.split(key)
    x = jax.random.normal(kx, (batch, input_size), jnp.float32)
    w1, b1, w2, b2 = init_params(kp, input_size, hidden_size, output_size)

    # One-time weight prep (hoisted out of the forward path).
    w1p, b1p, w2p, b2p = prep_params(w1, b1, w2, b2)

    out = ffn_forward(x, w1p, b1p, w2p, b2p)
    out = jax.block_until_ready(out)
    assert out.shape == (batch, output_size)

    # Pure-f32 reference (module semantics) — kernel is f32 end to end.
    ref = jax.nn.sigmoid(jnp.maximum(x @ w1 + b1, 0.0) @ w2 + b2)
    assert jnp.allclose(out, ref, atol=1e-5, rtol=1e-5)

    print("KERNEL_OK")
</pallas_src>

<mosaic_0001>
module attributes {stable_mosaic.version = 11 : i64} {
  func.func @_ffn_kernel(%arg0: i32, %arg1: memref<8x30xf32, #tpu.memory_space<vmem>>, %arg2: memref<30x256xf32, #tpu.memory_space<vmem>>, %arg3: memref<1x256xf32, #tpu.memory_space<vmem>>, %arg4: memref<1x256xf32, #tpu.memory_space<vmem>>, %arg5: memref<1x1xf32, #tpu.memory_space<smem>>, %arg6: memref<8x1xf32, #tpu.memory_space<vmem>>) attributes {dimension_semantics = [#tpu.dimension_semantics<parallel>], iteration_bounds = array<i64: 1>, scalar_prefetch = 0 : i64, scratch_operands = 0 : i64, tpu.core_type = #tpu.core_type<tc>, window_params = [{transform_indices = @transform_0, window_bounds = array<i64: 8, 30>}, {pipeline_mode = #tpu.pipeline_mode<synchronous>, transform_indices = @transform_1, window_bounds = array<i64: 30, 256>}, {pipeline_mode = #tpu.pipeline_mode<synchronous>, transform_indices = @transform_2, window_bounds = array<i64: 1, 256>}, {pipeline_mode = #tpu.pipeline_mode<synchronous>, transform_indices = @transform_3, window_bounds = array<i64: 1, 256>}, {transform_indices = @transform_4, window_bounds = array<i64: 1, 1>}, {transform_indices = @transform_5, window_bounds = array<i64: 8, 1>}]} {
    %c0 = arith.constant 0 : index
    %c0_0 = arith.constant 0 : index
    %0 = vector.load %arg1[%c0, %c0_0] : memref<8x30xf32, #tpu.memory_space<vmem>>, vector<8x30xf32>
    %c0_1 = arith.constant 0 : index
    %c0_2 = arith.constant 0 : index
    %1 = vector.load %arg2[%c0_1, %c0_2] : memref<30x256xf32, #tpu.memory_space<vmem>>, vector<30x256xf32>
    %cst = arith.constant dense<0.000000e+00> : vector<8x256xf32>
    %2 = tpu.matmul %0, %1, %cst {dimension_numbers = #tpu.dot_dimension_numbers<[1], [0], [0], [1], [0, 0, 1, 1], [], []>} : vector<8x30xf32>, vector<30x256xf32>, vector<8x256xf32> -> vector<8x256xf32>
    %c0_3 = arith.constant 0 : index
    %c0_4 = arith.constant 0 : index
    %3 = vector.load %arg3[%c0_3, %c0_4] : memref<1x256xf32, #tpu.memory_space<vmem>>, vector<1x256xf32>
    %4 = vector.broadcast %3 : vector<1x256xf32> to vector<8x256xf32>
    %5 = arith.addf %2, %4 : vector<8x256xf32>
    %cst_5 = arith.constant 0.000000e+00 : f32
    %6 = vector.broadcast %cst_5 : f32 to vector<8x256xf32>
    %7 = arith.maximumf %5, %6 : vector<8x256xf32>
    %c0_6 = arith.constant 0 : index
    %c0_7 = arith.constant 0 : index
    %8 = vector.load %arg4[%c0_6, %c0_7] : memref<1x256xf32, #tpu.memory_space<vmem>>, vector<1x256xf32>
    %9 = vector.broadcast %8 : vector<1x256xf32> to vector<8x256xf32>
    %10 = arith.mulf %7, %9 : vector<8x256xf32>
    %cst_8 = arith.constant dense<0.000000e+00> : vector<8xf32>
    %11 = vector.multi_reduction <add>, %10, %cst_8 [1] : vector<8x256xf32> to vector<8xf32>
    %12 = vector.shape_cast %11 : vector<8xf32> to vector<8x1xf32>
    %c0_9 = arith.constant 0 : index
    %c0_10 = arith.constant 0 : index
    %13 = memref.load %arg5[%c0_9, %c0_10] : memref<1x1xf32, #tpu.memory_space<smem>>
    %14 = vector.broadcast %13 : f32 to vector<8x1xf32>
    %15 = arith.addf %12, %14 : vector<8x1xf32>
    %16 = arith.negf %15 : vector<8x1xf32>
    %17 = math.exp %16 : vector<8x1xf32>
    %cst_11 = arith.constant 1.000000e+00 : f32
    %18 = vector.broadcast %cst_11 : f32 to vector<8x1xf32>
    %19 = arith.addf %18, %17 : vector<8x1xf32>
    %20 = arith.divf %18, %19 : vector<8x1xf32>
    %c0_12 = arith.constant 0 : index
    %c0_13 = arith.constant 0 : index
    %21 = vector.load %arg6[%c0_12, %c0_13] : memref<8x1xf32, #tpu.memory_space<vmem>>, vector<8x1xf32>
    tpu.vector_store %arg6[%c0_12, %c0_13], %20 {strides = array<i32>} : memref<8x1xf32, #tpu.memory_space<vmem>>, vector<8x1xf32>,
    return
  }
  func.func @transform_0(%arg0: i32) -> (i32, i32) {
    %c0_i32 = arith.constant 0 : i32
    %c0_i32_0 = arith.constant 0 : i32
    return %arg0, %c0_i32 : i32, i32
  }
  func.func @transform_1(%arg0: i32) -> (i32, i32) {
    %c0_i32 = arith.constant 0 : i32
    %c0_i32_0 = arith.constant 0 : i32
    %c0_i32_1 = arith.constant 0 : i32
    return %c0_i32, %c0_i32_0 : i32, i32
  }
  func.func @transform_2(%arg0: i32) -> (i32, i32) {
    %c0_i32 = arith.constant 0 : i32
    %c0_i32_0 = arith.constant 0 : i32
    %c0_i32_1 = arith.constant 0 : i32
    return %c0_i32, %c0_i32_0 : i32, i32
  }
  func.func @transform_3(%arg0: i32) -> (i32, i32) {
    %c0_i32 = arith.constant 0 : i32
    %c0_i32_0 = arith.constant 0 : i32
    %c0_i32_1 = arith.constant 0 : i32
    return %c0_i32, %c0_i32_0 : i32, i32
  }
  func.func @transform_4(%arg0: i32) -> (i32, i32) {
    %c0_i32 = arith.constant 0 : i32
    %c0_i32_0 = arith.constant 0 : i32
    %c0_i32_1 = arith.constant 0 : i32
    return %c0_i32, %c0_i32_0 : i32, i32
  }
  func.func @transform_5(%arg0: i32) -> (i32, i32) {
    %c0_i32 = arith.constant 0 : i32
    %c0_i32_0 = arith.constant 0 : i32
    return %arg0, %c0_i32 : i32, i32
  }
}

</mosaic_0001>

<bundles_post_ra>
// kernel: ffn_forward.1
= control target key start
LH: loop header
LB: loop body
LE: loop exit
PB: predicated region body
PF: predicated region fallthrough
CT: control target
= control target key end

     0   :  { %11 = vsyncpa [#allocation4], 0  ;;  %s296_s0 = inlined_call_operand.hbm [shape: f32[8,30], index: 0, kind: input, shape index: {}]   ;;  %s297_s1 = inlined_call_operand.hbm [shape: f32[30,256], index: 1, kind: input, shape index: {}]   ;;  %s298_s2 = inlined_call_operand.vmem [shape: f32[1,256], index: 2, kind: input, shape index: {}]   ;;  %s299_s3 = inlined_call_operand.vmem [shape: f32[1,256], index: 3, kind: input, shape index: {}]   ;;  %s300_s4 = inlined_call_operand.<no memory space> [shape: f32[1,1], index: 4, kind: input, shape index: {}]   ;;  %s301_s5 = inlined_call_operand.vmem [shape: f32[8,1], index: 5, kind: output, shape index: {}]  }
   0x1   :  { %12 = vsyncpa [#allocation6], 0  ;;  %s243_s18 = smov [#allocation3]   ;;  %s244_s20 = smov [#allocation5]  }
   0x2   :  { %s19_s19 = sshll.u32 %s243_s18, 4  ;;  %s28_s21 = sshll.u32 %s244_s20, 4  ;;  %s20_s19 = int_to_ptr.vmem [resolvable:$true] %s19_s19  ;;  %s29_s21 = int_to_ptr.vmem [resolvable:$true] %s28_s21 }
   0x3   :  { %s207_s22 = scalar_lea.vmem %s20_s19, 128  ;;  %p212_p1 = scmp.lt.s32.totalorder %s20_s19, %s20_s19 }
   0x4   :  { %p208_p0 = scmp.ne.s32.totalorder %s20_s19, %s207_s22  ;;  %p213_p2 = scmp.lt.s32.totalorder %s207_s22, %s207_s22 }
   0x6   :  { %p214_p3 = por %p213_p2, %p212_p1 }
   0x8   :  { %p215_p4 = pnand %p214_p3, %p208_p0 }
   0xa   :  { %218 = shalt.err (!%p215_p4)
}
   0xb   :  { %22 = dma.hbm_to_vmem [thread:$0]  %s296_s0, 128, %s20_s19, [#allocation4]  }
   0xc   :  { %s227_s25 = scalar_lea.vmem %s29_s21, 1024  ;;  %p232_p6 = scmp.lt.s32.totalorder %s29_s21, %s29_s21 }
   0xd   :  { %p228_p5 = scmp.ne.s32.totalorder %s29_s21, %s227_s25  ;;  %p233_p7 = scmp.lt.s32.totalorder %s227_s25, %s227_s25 }
   0xf   :  { %p234_p8 = por %p233_p7, %p232_p6 }
  0x11   :  { %p235_p9 = pnand %p234_p8, %p228_p5 }
  0x13   :  { %238 = shalt.err (!%p235_p9)
}
  0x14   :  { %s245_s26 = smov 256   ;;  %s246_s27 = smov 16  }
  0x15   :  { %34 = dma.hbm_to_vmem [thread:$0]  %s297_s1, 1024, %s29_s21, [#allocation6], %s245_s26, %s245_s26, %s246_s27  }
  0x16   :  { %239 = dma.done.wait [#allocation4], 128  }
  0x17   :  { %240 = vsyncadd [#allocation4], 4294967168 }
  0x18   :  { %241 = dma.done.wait [#allocation6], 1024  }
  0x19   :  { %242 = vsyncadd [#allocation6], 4294966272  ;;  %v247_v0 = vmov 0.0   ;;  %vm72_vm0 = vcmask 1045504   ;;  %v55_v1 = vld [vmem:[#allocation5 + $0x38] sm:$0x3f]  ;;  %v58_v10 = vlaneseq  ;;  %v170_v29 = vstv %s300_s4 }
  0x1a   :  { %143 = vmatprep.mubr.f32.mxu0 %v247_v0  ;;  %v54_v2 = vld [vmem:[#allocation5 + $0x30] sm:$0x3f]  ;;  %v53_v3 = vld [vmem:[#allocation5 + $0x28] sm:$0xff]  ;;  %186 = vmatprep.subr.msk.mxu0 %vm72_vm0, %v55_v1  ;;  %v52_v4 = vld [vmem:[#allocation5 + $0x20] sm:$0xff]  ;;  %vm68_vm1 = vcmask 244736   ;;  %vm178_vm2 = vcmask 7168  }
  0x1b   :  { %187 = vmatpush1.msk.msra.mxu0 %vm72_vm0, %v54_v2  ;;  %v51_v5 = vld [vmem:[#allocation5 + $0x18] sm:$0xff]  ;;  %v50_v6 = vld [vmem:[#allocation5 + $0x10] sm:$0xff]  ;;  %v49_v7 = vld [vmem:[#allocation5 + $0x8] sm:$0xff]  ;;  %v59_v11 = vshrl.u32 %v58_v10, 7 }
  0x1c   :  { %105 = vmatprep.subr.mxu0 %v53_v3  ;;  %v48_v8 = vld [vmem:[#allocation5] sm:$0xff]  ;;  %v47_v9 = vld [vmem:[#allocation3] sm:$0xff] }
  0x1d   :  { %106 = vmatpush1.msra.mxu0 %v52_v4  ;;  %v60_v12 = vsub.s32 0, %v59_v11  ;;  %v56_v13 = vld [vmem:[%s298_s2] sm:$0x3]  ;;  %v64_v14 = vsub.s32 1, %v59_v11 }
  0x1e   :  { %107 = vmatprep.subr.mxu0 %v51_v5  ;;  %v152_v18 = vld [vmem:[%s299_s3] sm:$0x3] }
  0x1f   :  { %108 = vmatpush1.msra.mxu0 %v50_v6  ;;  %v61_v15 = vrot.slane %v56_v13, %v60_v12  ;;  %v65_v16 = vrot.slane %v56_v13, %v64_v14  ;;  %v157_v23 = vrot.slane %v152_v18, %v60_v12  ;;  %v161_v24 = vrot.slane %v152_v18, %v64_v14 }
  0x20   :  { %109 = vmatprep.subr.mxu0 %v49_v7 }
  0x21   :  { %110 = vmatpush1.msra.mxu0 %v48_v8 }
  0x22   :  { %188 = vmatmul.mubr.msk.f32.vlgmr.msra.gmra.mxu0 %vm68_vm1, %v47_v9 }
  0xe2   :  { %v145_v17 = vpop.f32.mrf.mxu0 }
  0xe3   :  { %v146_v19 = vadd.f32 %v145_v17, %v61_v15 }
  0xe4   :  { %v147_v20 = vpop.f32.mrf.mxu0 }
  0xe5   :  { %v150_v21 = vmax.f32 %v146_v19, 0.0  ;;  %v148_v22 = vadd.f32 %v147_v20, %v65_v16 }
  0xe7   :  { %v151_v25 = vmax.f32 %v148_v22, 0.0  ;;  %v164_v26 = vmul.f32 %v157_v23, %v150_v21 }
  0xe9   :  { %v165_v27 = vmul.f32 %v161_v24, %v151_v25 }
  0xeb   :  { %v166_v28 = vadd.f32 %v165_v27, %v164_v26 }
  0xed   :  { %167 = vadd.xlane.f32.xlu0 %v166_v28 }
 0x176   :  { %v168_v30 = vpop.xlane.xlu0 %167 }
 0x177   :  { %v171_v31 = vadd.f32 %v170_v29, %v168_v30 }
 0x179   :  { %v189_v32 = vmul.f32 -1.442695, %v171_v31 }
 0x17b   :  { %195 = vpow2.f32 %v189_v32 }
 0x188   :  { %v196_v33 = vpop.eup %195 }
 0x189   :  { %v175_v34 = vadd.f32 1.0, %v196_v33 }
 0x18b   :  { %197 = vrcp.f32 %v175_v34 }
 0x198   :  { %v198_v35 = vpop.eup %197 }
 0x199   :  { %179 = vst.msk [vmem:[%s301_s5] sm:$0xff] %vm178_vm2, %v198_v35 }
 0x19a   :  { %184 = vsyncpa [#allocation4], 1 }
 0x19b   :  { %185 = vsyncpa [#allocation6], 1 }

</bundles_post_ra>
